<compile_context>
chip_gen: v7x
topology: tpu7x:2x2x1
jax: 0.10.0
libtpu: 0.0.40
codegen_flags: <defaults>
</compile_context>

<pallas_src>
import functools

import jax
import jax.numpy as jnp
from jax.experimental import pallas as pl
from jax.experimental.pallas import tpu as pltpu


def _round_up(x, m):
    return ((x + m - 1) // m) * m


def _largest_divisor_tile(dim, max_tile, mult=8):
    """Largest tile <= max_tile that divides `dim` exactly and is a multiple of
    `mult` (keeps the (8,128) sublane layout rule), falling back to the full dim
    if no such divisor exists.  Exact division matters because this axis is the
    matmul contraction axis (no tile may mix real and out-of-range channels)."""
    if dim <= max_tile:
        return dim
    t = (min(max_tile, dim) // mult) * mult
    while t >= mult:
        if dim % t == 0:
            return t
        t -= mult
    return dim


def _regression_head_kernel(x_ref, w1_ref, b1_ref, w2_ref, b2_ref, o_ref,
                            acc_ref, *, inv_hw):
    # x_ref : (TN, TC, HW)  activation tile in native (N, C, HW) layout
    # w1_ref: (TC, HID)     first linear weight tile, native dtype
    # b1_ref: (1, HID)      first bias, f32
    # w2_ref: (HID, KPAD)   second linear weight, zero-padded to 128 lanes
    # b2_ref: (1, KPAD)     second bias, zero-padded, f32
    # o_ref : (TN, KPAD)    output tile (lane-dense)
    # acc_ref:(TN, HID)     f32 running partial sum of pooled_sum @ W1
    c_step = pl.program_id(1)

    # Spatial sum over the lane axis (XLU) accumulated in f32 without
    # materializing a full-size f32 copy of the tile.
    pooled = jnp.sum(x_ref[...], axis=-1, dtype=jnp.float32)          # (TN, TC)

    # Partial contribution of this channel tile to pooled_sum @ W1 (MXU).
    partial = jnp.dot(pooled.astype(w1_ref.dtype), w1_ref[...],
                      preferred_element_type=jnp.float32)              # (TN, HID)

    @pl.when(c_step == 0)
    def _():
        acc_ref[...] = partial

    @pl.when(c_step > 0)
    def _():
        acc_ref[...] += partial

    @pl.when(c_step == pl.num_programs(1) - 1)
    def _():
        # mean pool = (spatial sum) * 1/HW, applied once as an f32 scalar.
        h = acc_ref[...] * inv_hw + b1_ref[...]
        h = jnp.maximum(h, 0.0)
        out = jnp.dot(h.astype(w2_ref.dtype), w2_ref[...],
                      preferred_element_type=jnp.float32) + b2_ref[...]
        o_ref[...] = out.astype(o_ref.dtype)


def regression_head(x_nchw, w1, b1, w2, b2):
    """x_nchw: (N, C, H, W) activation in its native dtype (f32/bf16).
    Params use PyTorch Linear shapes transposed: w1: (C, 128), b1: (128,),
    w2: (128, K), b2: (K,)."""
    n, c, h, w = x_nchw.shape
    hw = h * w
    hidden = w1.shape[1]
    k = w2.shape[1]

    # Free reshape only -- no transpose / pad of the big activation tensor.
    x = x_nchw.reshape(n, c, hw)

    # ---- tile selection ----------------------------------------------------
    # Batch tile: up to 64 rows (fills MXU rows in the epilogue matmuls) while
    # keeping several "parallel" grid steps for v7x's two TensorCores at
    # production batch sizes; small batches use the full dim (legal block).
    tn = n if n <= 64 else 64

    # Channel tile: one (tn, tc, HW) slab targets ~8 MiB (double-buffered by the
    # pipeline -> ~16 MiB); tc divides C exactly (contraction-axis safety).
    itemsize = jnp.dtype(x.dtype).itemsize
    budget = 8 * 1024 * 1024
    max_tc = max(8, budget // max(1, tn * hw * itemsize))
    tc = _largest_divisor_tile(c, max_tc)

    grid = (pl.cdiv(n, tn), c // tc)

    # ---- small-parameter plumbing (tiny arrays, negligible cost) -----------
    k_pad = _round_up(max(k, 128), 128)
    b1_2d = b1.reshape(1, hidden).astype(jnp.float32)
    w2_p = jnp.zeros((hidden, k_pad), w2.dtype).at[:, :k].set(w2)
    b2_p = jnp.zeros((1, k_pad), jnp.float32).at[:, :k].set(b2.astype(jnp.float32))

    kernel = functools.partial(_regression_head_kernel, inv_hw=1.0 / float(hw))

    out_p = pl.pallas_call(
        kernel,
        out_shape=jax.ShapeDtypeStruct((n, k_pad), jnp.float32),
        grid_spec=pltpu.PrefetchScalarGridSpec(
            num_scalar_prefetch=0,
            grid=grid,
            in_specs=[
                pl.BlockSpec((tn, tc, hw), lambda i, ci: (i, ci, 0)),
                pl.BlockSpec((tc, hidden), lambda i, ci: (ci, 0)),
                pl.BlockSpec((1, hidden), lambda i, ci: (0, 0)),
                pl.BlockSpec((hidden, k_pad), lambda i, ci: (0, 0)),
                pl.BlockSpec((1, k_pad), lambda i, ci: (0, 0)),
            ],
            out_specs=pl.BlockSpec((tn, k_pad), lambda i, ci: (i, 0)),
            scratch_shapes=[pltpu.VMEM((tn, hidden), jnp.float32)],
        ),
        compiler_params=pltpu.CompilerParams(
            dimension_semantics=("parallel", "arbitrary"),
            vmem_limit_bytes=48 * 1024 * 1024,
        ),
    )(x, w1, b1_2d, w2_p, b2_p)

    return out_p[:, :k]


def _reference(x_nchw, w1, b1, w2, b2):
    pooled = jnp.mean(x_nchw.astype(jnp.float32), axis=(2, 3))   # (N, C)
    hcore = jnp.maximum(pooled @ w1 + b1, 0.0)
    return hcore @ w2 + b2


if __name__ == "__main__":
    # Small shapes consistent with the module: batch=2, in_channels=4, 16x16 spatial.
    N, C, H, W = 2, 4, 16, 16
    HIDDEN, K = 128, 2

    key = jax.random.PRNGKey(0)
    kx, kw1, kb1, kw2, kb2 = jax.random.split(key, 5)

    x = jax.random.normal(kx, (N, C, H, W), dtype=jnp.float32)
    # PyTorch Linear weights are (out, in); we store them transposed (in, out).
    w1 = jax.random.normal(kw1, (C, HIDDEN), dtype=jnp.float32) * 0.1
    b1 = jax.random.normal(kb1, (HIDDEN,), dtype=jnp.float32) * 0.1
    w2 = jax.random.normal(kw2, (HIDDEN, K), dtype=jnp.float32) * 0.1
    b2 = jax.random.normal(kb2, (K,), dtype=jnp.float32) * 0.1

    out = regression_head(x, w1, b1, w2, b2)
    out = jax.block_until_ready(out)

    ref = _reference(x, w1, b1, w2, b2)
    assert out.shape == (N, K), out.shape
    assert jnp.allclose(out, ref, atol=1e-4, rtol=1e-4), "mismatch vs reference"

    print("KERNEL_OK")
</pallas_src>

<mosaic_0001>
module attributes {stable_mosaic.version = 11 : i64} {
  func.func @_regression_head_kernel(%arg0: i32, %arg1: i32, %arg2: memref<2x4x256xf32, #tpu.memory_space<vmem>>, %arg3: memref<4x128xf32, #tpu.memory_space<vmem>>, %arg4: memref<1x128xf32, #tpu.memory_space<vmem>>, %arg5: memref<128x128xf32, #tpu.memory_space<vmem>>, %arg6: memref<1x128xf32, #tpu.memory_space<vmem>>, %arg7: memref<2x128xf32, #tpu.memory_space<vmem>>, %arg8: memref<2x128xf32, #tpu.memory_space<vmem>>) attributes {dimension_semantics = [#tpu.dimension_semantics<parallel>, #tpu.dimension_semantics<arbitrary>], iteration_bounds = array<i64: 1, 1>, scalar_prefetch = 0 : i64, scratch_operands = 1 : i64, tpu.core_type = #tpu.core_type<tc>, window_params = [{transform_indices = @transform_0, window_bounds = array<i64: 2, 4, 256>}, {transform_indices = @transform_1, window_bounds = array<i64: 4, 128>}, {pipeline_mode = #tpu.pipeline_mode<synchronous>, transform_indices = @transform_2, window_bounds = array<i64: 1, 128>}, {pipeline_mode = #tpu.pipeline_mode<synchronous>, transform_indices = @transform_3, window_bounds = array<i64: 128, 128>}, {pipeline_mode = #tpu.pipeline_mode<synchronous>, transform_indices = @transform_4, window_bounds = array<i64: 1, 128>}, {transform_indices = @transform_5, window_bounds = array<i64: 2, 128>}]} {
    %c0 = arith.constant 0 : index
    %c0_0 = arith.constant 0 : index
    %c0_1 = arith.constant 0 : index
    %0 = vector.load %arg2[%c0, %c0_0, %c0_1] : memref<2x4x256xf32, #tpu.memory_space<vmem>>, vector<2x4x256xf32>
    %cst = arith.constant dense<0.000000e+00> : vector<2x4xf32>
    %1 = vector.multi_reduction <add>, %0, %cst [2] : vector<2x4x256xf32> to vector<2x4xf32>
    %c0_2 = arith.constant 0 : index
    %c0_3 = arith.constant 0 : index
    %2 = vector.load %arg3[%c0_2, %c0_3] : memref<4x128xf32, #tpu.memory_space<vmem>>, vector<4x128xf32>
    %cst_4 = arith.constant dense<0.000000e+00> : vector<2x128xf32>
    %3 = tpu.matmul %1, %2, %cst_4 {dimension_numbers = #tpu.dot_dimension_numbers<[1], [0], [0], [1], [0, 0, 1, 1], [], []>} : vector<2x4xf32>, vector<4x128xf32>, vector<2x128xf32> -> vector<2x128xf32>
    %c0_i32 = arith.constant 0 : i32
    %4 = arith.cmpi eq, %arg1, %c0_i32 : i32
    %5 = arith.extui %4 : i1 to i32
    %c0_i32_5 = arith.constant 0 : i32
    %6 = arith.cmpi ne, %5, %c0_i32_5 : i32
    scf.if %6 {
      %c0_10 = arith.constant 0 : index
      %c0_11 = arith.constant 0 : index
      %13 = vector.load %arg8[%c0_10, %c0_11] : memref<2x128xf32, #tpu.memory_space<vmem>>, vector<2x128xf32>
      tpu.vector_store %arg8[%c0_10, %c0_11], %3 {strides = array<i32>} : memref<2x128xf32, #tpu.memory_space<vmem>>, vector<2x128xf32>,
    } else {
    }
    %c0_i32_6 = arith.constant 0 : i32
    %7 = arith.cmpi sgt, %arg1, %c0_i32_6 : i32
    %8 = arith.extui %7 : i1 to i32
    %c0_i32_7 = arith.constant 0 : i32
    %9 = arith.cmpi ne, %8, %c0_i32_7 : i32
    scf.if %9 {
      %c0_10 = arith.constant 0 : index
      %c0_11 = arith.constant 0 : index
      %13 = vector.load %arg8[%c0_10, %c0_11] : memref<2x128xf32, #tpu.memory_space<vmem>>, vector<2x128xf32>
      %14 = arith.addf %13, %3 : vector<2x128xf32>
      %c0_12 = arith.constant 0 : index
      %c0_13 = arith.constant 0 : index
      %15 = vector.load %arg8[%c0_12, %c0_13] : memref<2x128xf32, #tpu.memory_space<vmem>>, vector<2x128xf32>
      tpu.vector_store %arg8[%c0_12, %c0_13], %14 {strides = array<i32>} : memref<2x128xf32, #tpu.memory_space<vmem>>, vector<2x128xf32>,
    } else {
    }
    %c0_i32_8 = arith.constant 0 : i32
    %10 = arith.cmpi eq, %arg1, %c0_i32_8 : i32
    %11 = arith.extui %10 : i1 to i32
    %c0_i32_9 = arith.constant 0 : i32
    %12 = arith.cmpi ne, %11, %c0_i32_9 : i32
    scf.if %12 {
      %c0_10 = arith.constant 0 : index
      %c0_11 = arith.constant 0 : index
      %13 = vector.load %arg8[%c0_10, %c0_11] : memref<2x128xf32, #tpu.memory_space<vmem>>, vector<2x128xf32>
      %cst_12 = arith.constant 3.906250e-03 : f32
      %14 = vector.broadcast %cst_12 : f32 to vector<2x128xf32>
      %15 = arith.mulf %13, %14 : vector<2x128xf32>
      %c0_13 = arith.constant 0 : index
      %c0_14 = arith.constant 0 : index
      %16 = vector.load %arg4[%c0_13, %c0_14] : memref<1x128xf32, #tpu.memory_space<vmem>>, vector<1x128xf32>
      %17 = vector.broadcast %16 : vector<1x128xf32> to vector<2x128xf32>
      %18 = arith.addf %15, %17 : vector<2x128xf32>
      %cst_15 = arith.constant 0.000000e+00 : f32
      %19 = vector.broadcast %cst_15 : f32 to vector<2x128xf32>
      %20 = arith.maximumf %18, %19 : vector<2x128xf32>
      %c0_16 = arith.constant 0 : index
      %c0_17 = arith.constant 0 : index
      %21 = vector.load %arg5[%c0_16, %c0_17] : memref<128x128xf32, #tpu.memory_space<vmem>>, vector<128x128xf32>
      %cst_18 = arith.constant dense<0.000000e+00> : vector<2x128xf32>
      %22 = tpu.matmul %20, %21, %cst_18 {dimension_numbers = #tpu.dot_dimension_numbers<[1], [0], [0], [1], [0, 0, 1, 1], [], []>} : vector<2x128xf32>, vector<128x128xf32>, vector<2x128xf32> -> vector<2x128xf32>
      %c0_19 = arith.constant 0 : index
      %c0_20 = arith.constant 0 : index
      %23 = vector.load %arg6[%c0_19, %c0_20] : memref<1x128xf32, #tpu.memory_space<vmem>>, vector<1x128xf32>
      %24 = vector.broadcast %23 : vector<1x128xf32> to vector<2x128xf32>
      %25 = arith.addf %22, %24 : vector<2x128xf32>
      %c0_21 = arith.constant 0 : index
      %c0_22 = arith.constant 0 : index
      %26 = vector.load %arg7[%c0_21, %c0_22] : memref<2x128xf32, #tpu.memory_space<vmem>>, vector<2x128xf32>
      tpu.vector_store %arg7[%c0_21, %c0_22], %25 {strides = array<i32>} : memref<2x128xf32, #tpu.memory_space<vmem>>, vector<2x128xf32>,
    } else {
    }
    return
  }
  func.func @transform_0(%arg0: i32, %arg1: i32) -> (i32, i32, i32) {
    %c0_i32 = arith.constant 0 : i32
    %c0_i32_0 = arith.constant 0 : i32
    return %arg0, %arg1, %c0_i32 : i32, i32, i32
  }
  func.func @transform_1(%arg0: i32, %arg1: i32) -> (i32, i32) {
    %c0_i32 = arith.constant 0 : i32
    %c0_i32_0 = arith.constant 0 : i32
    return %arg1, %c0_i32 : i32, i32
  }
  func.func @transform_2(%arg0: i32, %arg1: i32) -> (i32, i32) {
    %c0_i32 = arith.constant 0 : i32
    %c0_i32_0 = arith.constant 0 : i32
    %c0_i32_1 = arith.constant 0 : i32
    return %c0_i32, %c0_i32_0 : i32, i32
  }
  func.func @transform_3(%arg0: i32, %arg1: i32) -> (i32, i32) {
    %c0_i32 = arith.constant 0 : i32
    %c0_i32_0 = arith.constant 0 : i32
    %c0_i32_1 = arith.constant 0 : i32
    return %c0_i32, %c0_i32_0 : i32, i32
  }
  func.func @transform_4(%arg0: i32, %arg1: i32) -> (i32, i32) {
    %c0_i32 = arith.constant 0 : i32
    %c0_i32_0 = arith.constant 0 : i32
    %c0_i32_1 = arith.constant 0 : i32
    return %c0_i32, %c0_i32_0 : i32, i32
  }
  func.func @transform_5(%arg0: i32, %arg1: i32) -> (i32, i32) {
    %c0_i32 = arith.constant 0 : i32
    %c0_i32_0 = arith.constant 0 : i32
    return %arg0, %c0_i32 : i32, i32
  }
}

</mosaic_0001>

<bundles_post_ra>
// kernel: tpu_custom_call.1
= control target key start
LH: loop header
LB: loop body
LE: loop exit
PB: predicated region body
PF: predicated region fallthrough
CT: control target
= control target key end

     0   :  { %10 = vsyncpa [#allocation4], 0  ;;  %s603_s0 = inlined_call_operand.hbm [shape: f32[2,4,256], index: 0, kind: input, shape index: {}]   ;;  %s604_s1 = inlined_call_operand.hbm [shape: f32[4,128], index: 1, kind: input, shape index: {}]   ;;  %s605_s2 = inlined_call_operand.vmem [shape: f32[1,128], index: 2, kind: input, shape index: {}]   ;;  %s606_s3 = inlined_call_operand.hbm [shape: f32[128,128], index: 3, kind: input, shape index: {}]   ;;  %s607_s4 = inlined_call_operand.vmem [shape: f32[1,128], index: 4, kind: input, shape index: {}]   ;;  %s608_s5 = inlined_call_operand.hbm [shape: f32[2,128], index: 5, kind: output, shape index: {}]  }
   0x1   :  { %11 = vsyncpa [#allocation7], 0 }
   0x2   :  { %12 = vsyncpa [#allocation5], 0  ;;  %s498_s18 = smov [#allocation6]   ;;  %s499_s20 = smov [#allocation3]  }
   0x3   :  { %s31_s19 = sshll.u32 %s498_s18, 4  ;;  %s18_s21 = sshll.u32 %s499_s20, 4  ;;  %s32_s19 = int_to_ptr.vmem [resolvable:$true] %s31_s19  ;;  %s537_s21 = int_to_ptr.vmem [resolvable:$true] %s18_s21 }
   0x4   :  { %s404_s24 = scalar_lea.hbm %s604_s1, 64 }
   0x5   :  { %p405_p0 = scmp.ne.s32.totalorder %s604_s1, %s404_s24  ;;  %p408_p1 = scmp.lt.u32.totalorder %s404_s24, %s604_s1 }
   0x7   :  { %p410_p2 = pnand %p408_p1, %p405_p0 }
   0x9   :  { %413 = shalt.err (!%p410_p2)
}
   0xa   :  { %s414_s29 = scalar_lea.vmem %s32_s19, 64  ;;  %p419_p4 = scmp.lt.s32.totalorder %s32_s19, %s32_s19 }
   0xb   :  { %p415_p3 = scmp.ne.s32.totalorder %s32_s19, %s414_s29  ;;  %p420_p5 = scmp.lt.s32.totalorder %s414_s29, %s414_s29 }
   0xd   :  { %p421_p6 = por %p420_p5, %p419_p4 }
   0xf   :  { %p422_p7 = pnand %p421_p6, %p415_p3 }
  0x11   :  { %425 = shalt.err (!%p422_p7)
}
  0x12   :  { %34 = dma.hbm_to_vmem [thread:$0]  %s604_s1, 64, %s32_s19, [#allocation7]  }
  0x13   :  { %s426_s9 = scalar_lea.hbm %s603_s0, 256 }
  0x14   :  { %p427_p8 = scmp.ne.s32.totalorder %s603_s0, %s426_s9  ;;  %p430_p9 = scmp.lt.u32.totalorder %s426_s9, %s603_s0 }
  0x16   :  { %p432_p10 = pnand %p430_p9, %p427_p8 }
  0x18   :  { %435 = shalt.err (!%p432_p10)
}
  0x19   :  { %s436_s14 = scalar_lea.vmem %s537_s21, 256  ;;  %p441_p12 = scmp.lt.s32.totalorder %s537_s21, %s537_s21 }
  0x1a   :  { %p437_p11 = scmp.ne.s32.totalorder %s537_s21, %s436_s14  ;;  %p442_p13 = scmp.lt.s32.totalorder %s436_s14, %s436_s14 }
  0x1c   :  { %p443_p0 = por %p442_p13, %p441_p12 }
  0x1e   :  { %p444_p1 = pnand %p443_p0, %p437_p11 }
  0x20   :  { %447 = shalt.err (!%p444_p1)
}
  0x21   :  { %s500_s1 = smov 128   ;;  %s501_s15 = smov 8  }
  0x22   :  { %24 = dma.hbm_to_vmem [thread:$0]  %s603_s0, 256, %s537_s21, [#allocation4], %s500_s1, %s500_s1, %s501_s15  }
  0x23   :  { %s502_s18 = smov [#allocation8]   ;;  %s448_s23 = scalar_lea.hbm %s606_s3, 2048 }
  0x24   :  { %s42_s19 = sshll.u32 %s502_s18, 4  ;;  %p449_p2 = scmp.ne.s32.totalorder %s606_s3, %s448_s23  ;;  %s43_s19 = int_to_ptr.vmem [resolvable:$true] %s42_s19 }
  0x25   :  { %p452_p3 = scmp.lt.u32.totalorder %s448_s23, %s606_s3 }
  0x27   :  { %p454_p4 = pnand %p452_p3, %p449_p2 }
  0x29   :  { %457 = shalt.err (!%p454_p4)
}
  0x2a   :  { %s458_s28 = scalar_lea.vmem %s43_s19, 2048  ;;  %p463_p6 = scmp.lt.s32.totalorder %s43_s19, %s43_s19 }
  0x2b   :  { %p459_p5 = scmp.ne.s32.totalorder %s43_s19, %s458_s28  ;;  %p464_p7 = scmp.lt.s32.totalorder %s458_s28, %s458_s28 }
  0x2d   :  { %p465_p8 = por %p464_p7, %p463_p6 }
  0x2f   :  { %p466_p9 = pnand %p465_p8, %p459_p5 }
  0x31   :  { %469 = shalt.err (!%p466_p9)
}
  0x32   :  { %48 = dma.hbm_to_vmem [thread:$0]  %s606_s3, 2048, %s43_s19, [#allocation7], %s500_s1, %s500_s1, %s501_s15  }
  0x33   :  { %492 = dma.done.wait [#allocation4], 256  }
  0x34   :  { %493 = vsyncadd [#allocation4], 4294967040 }
  0x35   :  { %494 = dma.done.wait [#allocation7], 2112  }
  0x36   :  { %495 = vsyncadd [#allocation7], 4294965184  ;;  %vm68_vm0 = vcmask 1043456   ;;  %v60_v0 = vld [vmem:[#allocation3] sm:$0xff]  ;;  %v61_v1 = vld [vmem:[#allocation3 + $0x8] sm:$0xff]  ;;  %v503_v11 = vmov 0.0   ;;  %v82_v25 = vlaneseq }
  0x37   :  { %v64_v2 = vcombine.high %v60_v0, %v60_v0  ;;  %v69_v3 = vsel %vm68_vm0, %v60_v0, 0.0  ;;  %v65_v4 = vcombine.high %v61_v1, %v61_v1  ;;  %v74_v6 = vsel %vm68_vm0, %v61_v1, 0.0  ;;  %v79_v10 = vld [vmem:[#allocation6] sm:$0xf]  ;;  %329 = vmatprep.subr.mxu0 %v503_v11  ;;  %v196_v12 = vld [vmem:[#allocation8] sm:$0xff]  ;;  %v197_v13 = vld [vmem:[#allocation8 + $0x8] sm:$0xff] }
  0x38   :  { %vm504_vm1 = vmmov 0   ;;  %330 = vmatpush3.msk.msra.mxu0 %vm68_vm0, %v79_v10  ;;  %v198_v14 = vld [vmem:[#allocation8 + $0x10] sm:$0xff]  ;;  %v505_v15 = vmov 0.0|0.0   ;;  %v370_v16 = vpack.c.bf16 %v197_v13, %v196_v12  ;;  %v199_v17 = vld [vmem:[#allocation8 + $0x18] sm:$0xff]  ;;  %v200_v19 = vld [vmem:[#allocation8 + $0x20] sm:$0xff]  ;;  %v83_v26 = vand.u32 127, %v82_v25 }
  0x39   :  { %v70_v5 = vsel %vm68_vm0, %v64_v2, 0.0  ;;  %v75_v7 = vsel %vm68_vm0, %v65_v4, 0.0  ;;  %331 = vmatprep.mubr.msk.f32.mxu0 %vm504_vm1, %v503_v11  ;;  %366 = vmatprep.mubr.msk.f32.mxu1 %vm504_vm1, %v503_v11  ;;  %v373_v18 = vpack.c.bf16 %v199_v17, %v198_v14  ;;  %v201_v20 = vld [vmem:[#allocation8 + $0x28] sm:$0xff]  ;;  %v202_v22 = vld [vmem:[#allocation8 + $0x30] sm:$0xff]  ;;  %v203_v23 = vld [vmem:[#allocation8 + $0x38] sm:$0xff]  ;;  %v85_v27 = vshrl.u32 %v82_v25, 7 }
  0x3a   :  { %v71_v8 = vadd.f32 %v70_v5, %v69_v3  ;;  %v76_v9 = vadd.f32 %v75_v7, %v74_v6  ;;  %369 = vmatprep.subr.bf16.mxu1 %v505_v15  ;;  %v376_v21 = vpack.c.bf16 %v201_v20, %v200_v19  ;;  %v379_v24 = vpack.c.bf16 %v203_v23, %v202_v22  ;;  %v204_v34 = vld [vmem:[#allocation8 + $0x40] sm:$0xff]  ;;  %v205_v35 = vld [vmem:[#allocation8 + $0x48] sm:$0xff]  ;;  %v206_v37 = vld [vmem:[#allocation8 + $0x50] sm:$0xff]  ;;  %s506_s7 = smov [#allocation9]  }
  0x3b   :  { %371 = vmatpush3.bf16.msra.mxu1 %v370_v16  ;;  %v86_v29 = vsub.s32 %v83_v26, %v85_v27  ;;  %vm92_vm2 = vcmask 1041409   ;;  %vm94_vm3 = vcmask 31744   ;;  %v382_v36 = vpack.c.bf16 %v205_v35, %v204_v34  ;;  %v207_v38 = vld [vmem:[#allocation8 + $0x58] sm:$0xff]  ;;  %v208_v39 = vld [vmem:[#allocation8 + $0x60] sm:$0xff]  ;;  %v209_v41 = vld [vmem:[#allocation8 + $0x68] sm:$0xff]  ;;  %s296_s8 = sshll.u32 %s506_s7, 4  ;;  %s297_s8 = int_to_ptr.vmem [resolvable:$true] %s296_s8 }
  0x3c   :  { %72 = vadd.xlane.f32.xlu0 %v71_v8  ;;  %372 = vmatprep.subr.bf16.mxu1 %v505_v15  ;;  %v385_v40 = vpack.c.bf16 %v207_v38, %v206_v37  ;;  %v388_v42 = vpack.c.bf16 %v209_v41, %v208_v39  ;;  %v210_v43 = vld [vmem:[#allocation8 + $0x70] sm:$0xff]  ;;  %v211_v44 = vld [vmem:[#allocation8 + $0x78] sm:$0xff]  ;;  %v308_v49 = vld [vmem:[%s605_s2] ss:$0 sm:$0xff]  ;;  %s470_s9 = scalar_lea.vmem %s297_s8, 32  ;;  %p475_p11 = scmp.lt.s32.totalorder %s297_s8, %s297_s8 }
  0x3d   :  { %v391_v45 = vpack.c.bf16 %v211_v44, %v210_v43  ;;  %v309_v53 = vld [vmem:[%s607_s4] ss:$0 sm:$0xff]  ;;  %p471_p10 = scmp.ne.s32.totalorder %s297_s8, %s470_s9  ;;  %p476_p12 = scmp.lt.s32.totalorder %s470_s9, %s470_s9 }
  0x3f   :  { %374 = vmatpush3.bf16.msra.mxu1 %v373_v18  ;;  %p477_p13 = por %p476_p12, %p475_p11 }
  0x40   :  { %77 = vadd.xlane.f32.xlu0 %v76_v9  ;;  %375 = vmatprep.subr.bf16.mxu1 %v505_v15 }
  0x41   :  { %p478_p0 = pnand %p477_p13, %p471_p10 }
  0x43   :  { %377 = vmatpush3.bf16.msra.mxu1 %v376_v21 }
  0x44   :  { %378 = vmatprep.subr.bf16.mxu1 %v505_v15 }
  0x47   :  { %380 = vmatpush3.bf16.msra.mxu1 %v379_v24 }
  0x48   :  { %381 = vmatprep.subr.bf16.mxu1 %v505_v15 }
  0x4b   :  { %383 = vmatpush3.bf16.msra.mxu1 %v382_v36 }
  0x4c   :  { %384 = vmatprep.subr.bf16.mxu1 %v505_v15 }
  0x4f   :  { %386 = vmatpush3.bf16.msra.mxu1 %v385_v40 }
  0x50   :  { %387 = vmatprep.subr.bf16.mxu1 %v505_v15 }
  0x53   :  { %389 = vmatpush3.bf16.msra.mxu1 %v388_v42 }
  0x54   :  { %390 = vmatprep.subr.bf16.mxu1 %v505_v15 }
  0x57   :  { %392 = vmatpush3.bf16.msra.mxu1 %v391_v45 }
  0xc9   :  { %v73_v28 = vpop.xlane.xlu0 %72 }
  0xca   :  { %v87_v31 = vrot.slane %v73_v28, %v86_v29 }
  0xcd   :  { %v78_v30 = vpop.xlane.xlu0 %77 }
  0xce   :  { %v91_v32 = vrot.slane %v78_v30, %v86_v29 }
  0xd0   :  { %v93_v33 = vsel %vm92_vm2, %v91_v32, %v87_v31 }
  0xd1   :  { %332 = vmatmul.mubr.msk.f32.vlgmr.msra.gmra.mrb[0].mxu0 %vm94_vm3, %v93_v33 }
 0x1a4   :  { %v166_v46 = vpop.f32.mrb[0].mxu0 }
 0x1a5   :  { %174 = vst [vmem:[#allocation2] sm:$0x3] %v166_v46  ;;  %v333_v47 = vpop.f32.mrb[1].mxu0 }
 0x1ac   :  { %v185_v48 = vld [vmem:[#allocation2] sm:$0x3] }
 0x1ad   :  { %v186_v50 = vmul.f32 0.00390625, %v185_v48 }
 0x1af   :  { %v194_v51 = vadd.f32 %v308_v49, %v186_v50 }
 0x1b1   :  { %v195_v52 = vmax.f32 %v194_v51, 0.0 }
 0x1b3   :  { %367 = vmatmul.mubr.f32.vlgmr.msra.gmra.mrb[0].mxu1 %v195_v52 }
 0x286   :  { %v285_v54 = vpop.f32.mrb[0].mxu1 }
 0x287   :  { %v286_v55 = vadd.f32 %v309_v53, %v285_v54  ;;  %v368_v56 = vpop.f32.mrb[1].mxu1 }
 0x289   :  { %289 = vst [vmem:[#allocation9] sm:$0x3] %v286_v55 }
 0x28a   :  { %481 = shalt.err (!%p478_p0)
}
 0x28b   :  { %s482_s11 = scalar_lea.hbm %s608_s5, 32 }
 0x28c   :  { %p483_p1 = scmp.ne.s32.totalorder %s608_s5, %s482_s11  ;;  %p486_p2 = scmp.lt.u32.totalorder %s482_s11, %s608_s5 }
 0x28e   :  { %p488_p3 = pnand %p486_p2, %p483_p1 }
 0x290   :  { %491 = shalt.err (!%p488_p3)
}
 0x291   :  { %299 = dma.vmem_to_hbm [thread:$0]  %s297_s8, 32, %s608_s5, [#allocation5]  }
 0x292   :  { %496 = dma.done.wait [#allocation5], 32  }
 0x293   :  { %497 = vsyncadd [#allocation5], 4294967264 }
 0x294   :  { %303 = vsyncpa [#allocation4], 1 }
 0x295   :  { %304 = vsyncpa [#allocation7], 1 }
 0x296   :  { %305 = vsyncpa [#allocation5], 1 }

</bundles_post_ra>
